<compile_context>
chip_gen: v6e
topology: v6e:2x2x1
jax: 0.10.0
libtpu: 0.0.40
codegen_flags: <defaults>
</compile_context>

<pallas_src>
import jax
import jax.numpy as jnp
from jax.experimental import pallas as pl
from jax.experimental.pallas import tpu as pltpu

# Hidden layer sizes of ModelLarge
HIDDEN = (512, 256, 128, 64)
LANE = 128


def _round_up(n, m):
    return ((n + m - 1) // m) * m


# --------------------------------------------------------------------------
# Kernel
# --------------------------------------------------------------------------
def mlp_kernel(x_ref,
               w1_ref, b1_ref,
               w2_ref, b2_ref,
               w3_ref, b3_ref,
               w4_ref, b4_ref,
               w5_ref, b5_ref,
               o_ref):
    """Fused 5-layer MLP forward for one batch tile (runs fully in VMEM).

    bf16 activations/weights feed the MXU; accumulation is f32; bias + ReLU in
    f32; hidden activations are cast back to bf16 to halve spill traffic.
    """

    def dense(h_bf16, w_ref, b_ref, relu):
        acc = jnp.dot(h_bf16, w_ref[...], preferred_element_type=jnp.float32)
        acc = acc + b_ref[...]
        if relu:
            acc = jnp.maximum(acc, 0.0)
        return acc

    # Cast the input tile to bf16 exactly once.
    h = x_ref[...].astype(jnp.bfloat16)
    h = dense(h, w1_ref, b1_ref, True).astype(jnp.bfloat16)   # in  -> 512
    h = dense(h, w2_ref, b2_ref, True).astype(jnp.bfloat16)   # 512 -> 256
    h = dense(h, w3_ref, b3_ref, True).astype(jnp.bfloat16)   # 256 -> 128
    h = dense(h, w4_ref, b4_ref, True).astype(jnp.bfloat16)   # 128 -> 128 (64 + pad)
    h = dense(h, w5_ref, b5_ref, False)                        # 128 -> 128 (out + pad)
    o_ref[...] = h.astype(o_ref.dtype)


# --------------------------------------------------------------------------
# One-time parameter preparation (pad + cast, hoisted out of the forward)
# --------------------------------------------------------------------------
def prepare_params(params, weight_dtype=jnp.bfloat16):
    """Lane-pad the narrow layers and cast weights to bf16 once."""
    (w1, b1), (w2, b2), (w3, b3), (w4, b4), (w5, b5) = params
    out_dim = w5.shape[1]
    h4 = w4.shape[1]                      # 64
    h4_pad = _round_up(h4, LANE)          # 128
    out_pad = _round_up(out_dim, LANE)    # 128

    w4p = jnp.pad(w4, ((0, 0), (0, h4_pad - h4)))
    b4p = jnp.pad(b4, ((0, 0), (0, h4_pad - h4)))
    w5p = jnp.pad(w5, ((0, h4_pad - w5.shape[0]), (0, out_pad - out_dim)))
    b5p = jnp.pad(b5, ((0, 0), (0, out_pad - out_dim)))

    ws = tuple(w.astype(weight_dtype) for w in (w1, w2, w3, w4p, w5p))
    bs = tuple(b.astype(jnp.float32) for b in (b1, b2, b3, b4p, b5p))
    return {"ws": ws, "bs": bs, "out_dim": out_dim, "out_pad": out_pad}


# --------------------------------------------------------------------------
# Tile selection
# --------------------------------------------------------------------------
def _pick_batch_tile(B, batch_tile):
    # 128-aligned tiles for large batches (fills MXU M dimension), 8-aligned
    # for tiny ones so we don't over-pad.
    align = 128 if B >= 256 else 8
    tile = max(align, min(int(batch_tile), _round_up(B, align)))
    tile = _round_up(tile, align)
    # v7x megacore: keep >= 2 grid steps whenever the batch allows it so the
    # "parallel" batch axis can shard across both TensorCores.
    if B > align and _round_up(B, tile) // tile < 2:
        tile = max(align, _round_up((B + 1) // 2, align))
    return tile


# --------------------------------------------------------------------------
# Forward wrapper
# --------------------------------------------------------------------------
def model_large_forward(x, prepped, *, batch_tile=1024,
                        out_dtype=jnp.float32,
                        vmem_limit_bytes=64 * 1024 * 1024):
    """Run ModelLarge.forward via a single fused Pallas kernel, tiled over batch."""
    ws, bs = prepped["ws"], prepped["bs"]
    out_dim, out_pad = prepped["out_dim"], prepped["out_pad"]
    B, in_dim = x.shape

    tile = _pick_batch_tile(B, batch_tile)
    B_pad = _round_up(B, tile)
    xp = x if B_pad == B else jnp.pad(x, ((0, B_pad - B), (0, 0)))
    grid = (B_pad // tile,)

    # Weights & biases are grid-invariant full-array blocks (block == array
    # shape satisfies the (8,128) rule); constant block index across steps
    # lets Mosaic skip re-DMA. x / output are tiled over batch.
    def invariant_spec(arr):
        return pl.BlockSpec(arr.shape, lambda i: (0, 0))

    in_specs = [pl.BlockSpec((tile, in_dim), lambda i: (i, 0))]
    for w, b in zip(ws, bs):
        in_specs.append(invariant_spec(w))
        in_specs.append(invariant_spec(b))
    out_spec = pl.BlockSpec((tile, out_pad), lambda i: (i, 0))

    dims = [in_dim] + [w.shape[1] for w in ws]
    flops = 2 * B_pad * sum(a * b for a, b in zip(dims[:-1], dims[1:]))
    w_bytes = sum(int(w.size) * w.dtype.itemsize for w in ws)
    b_bytes = sum(int(b.size) * b.dtype.itemsize for b in bs)
    io_bytes = B_pad * (in_dim * x.dtype.itemsize
                        + out_pad * jnp.dtype(out_dtype).itemsize)
    cost = pl.CostEstimate(flops=int(flops), transcendentals=0,
                           bytes_accessed=int(w_bytes + b_bytes + io_bytes))

    args = [xp]
    for w, b in zip(ws, bs):
        args.extend((w, b))

    out_padded = pl.pallas_call(
        mlp_kernel,
        out_shape=jax.ShapeDtypeStruct((B_pad, out_pad), out_dtype),
        grid_spec=pltpu.PrefetchScalarGridSpec(
            num_scalar_prefetch=0,
            grid=grid,
            in_specs=in_specs,
            out_specs=out_spec,
        ),
        compiler_params=pltpu.CompilerParams(
            dimension_semantics=("parallel",),   # shards over the 2 TCs on v7x
            vmem_limit_bytes=vmem_limit_bytes,   # headroom for big tiles on v5e
        ),
        cost_estimate=cost,
    )(*args)

    # Strip batch padding and the zero-padded output lanes.
    # (Downstream consumers that accept the 128-lane-padded slab can take
    # out_padded directly and skip this copy.)
    return out_padded[:B, :out_dim]


# --------------------------------------------------------------------------
# Init & reference
# --------------------------------------------------------------------------
def init_params(key, in_dim, out_dim):
    """Deterministic init mimicking nn.Linear default U(-1/sqrt(fan_in), +)."""
    dims = (in_dim,) + HIDDEN + (out_dim,)
    params = []
    for fan_in, fan_out in zip(dims[:-1], dims[1:]):
        key, kw, kb = jax.random.split(key, 3)
        bound = 1.0 / jnp.sqrt(fan_in)
        w = jax.random.uniform(kw, (fan_in, fan_out), jnp.float32, -bound, bound)
        b = jax.random.uniform(kb, (1, fan_out), jnp.float32, -bound, bound)
        params.append((w, b))
    return params


def reference_forward(x, params, activation_dtype=jnp.bfloat16):
    """Plain-JAX reference of ModelLarge.forward.

    activation_dtype=bf16 matches the kernel's precision chain exactly
    (bf16 matmul inputs + bf16 hidden activations, f32 accumulation);
    activation_dtype=f32 is the pure-f32 reference.
    """
    h = x.astype(activation_dtype)
    n = len(params)
    for i, (w, b) in enumerate(params):
        acc = jnp.dot(h.astype(activation_dtype), w.astype(activation_dtype),
                      preferred_element_type=jnp.float32) + b.astype(jnp.float32)
        if i < n - 1:
            acc = jnp.maximum(acc, 0.0)
            h = acc.astype(activation_dtype)
        else:
            h = acc
    return h


if __name__ == "__main__":
    in_dim, out_dim = 32, 16

    key = jax.random.PRNGKey(0)
    key, kx = jax.random.split(key)
    params = init_params(key, in_dim, out_dim)

    # One-time parameter prep (lane-pad layers 4/5, bf16 weight cast).
    prepped = prepare_params(params)

    # Three cases: single-tile small batch, ragged batch (padding + multi-step
    # grid), and a >=256 batch exercising the 128-aligned / 2-step-grid path.
    for batch, tile in ((16, 256), (40, 32), (300, 1024)):
        x = jax.random.normal(jax.random.fold_in(kx, batch),
                              (batch, in_dim), jnp.float32)

        out = model_large_forward(x, prepped, batch_tile=tile)
        out = jax.block_until_ready(out)
        assert out.shape == (batch, out_dim)

        # Matched-precision reference (same bf16 matmul/activation chain).
        ref_bf16 = reference_forward(x, params, activation_dtype=jnp.bfloat16)
        assert jnp.allclose(out, ref_bf16, atol=1e-2, rtol=1e-2), \
            "Pallas output mismatch vs matched-precision reference"

        # Pure-f32 reference sanity check (bf16 chain -> looser tolerance).
        ref_f32 = reference_forward(x, params, activation_dtype=jnp.float32)
        assert jnp.allclose(out, ref_f32, atol=5e-2, rtol=5e-2), \
            "Pallas output drifted too far from f32 reference"

    print("KERNEL_OK")
</pallas_src>

<mosaic_0001>
module attributes {stable_mosaic.version = 11 : i64} {
  func.func @mlp_kernel(%arg0: i32, %arg1: memref<8x32xf32, #tpu.memory_space<vmem>>, %arg2: memref<32x512xbf16, #tpu.memory_space<vmem>>, %arg3: memref<1x512xf32, #tpu.memory_space<vmem>>, %arg4: memref<512x256xbf16, #tpu.memory_space<vmem>>, %arg5: memref<1x256xf32, #tpu.memory_space<vmem>>, %arg6: memref<256x128xbf16, #tpu.memory_space<vmem>>, %arg7: memref<1x128xf32, #tpu.memory_space<vmem>>, %arg8: memref<128x128xbf16, #tpu.memory_space<vmem>>, %arg9: memref<1x128xf32, #tpu.memory_space<vmem>>, %arg10: memref<128x128xbf16, #tpu.memory_space<vmem>>, %arg11: memref<1x128xf32, #tpu.memory_space<vmem>>, %arg12: memref<8x128xf32, #tpu.memory_space<vmem>>) attributes {dimension_semantics = [#tpu.dimension_semantics<parallel>], iteration_bounds = array<i64: 2>, scalar_prefetch = 0 : i64, scratch_operands = 0 : i64, tpu.core_type = #tpu.core_type<tc>, window_params = [{transform_indices = @transform_0, window_bounds = array<i64: 8, 32>}, {pipeline_mode = #tpu.pipeline_mode<synchronous>, transform_indices = @transform_1, window_bounds = array<i64: 32, 512>}, {pipeline_mode = #tpu.pipeline_mode<synchronous>, transform_indices = @transform_2, window_bounds = array<i64: 1, 512>}, {pipeline_mode = #tpu.pipeline_mode<synchronous>, transform_indices = @transform_3, window_bounds = array<i64: 512, 256>}, {pipeline_mode = #tpu.pipeline_mode<synchronous>, transform_indices = @transform_4, window_bounds = array<i64: 1, 256>}, {pipeline_mode = #tpu.pipeline_mode<synchronous>, transform_indices = @transform_5, window_bounds = array<i64: 256, 128>}, {pipeline_mode = #tpu.pipeline_mode<synchronous>, transform_indices = @transform_6, window_bounds = array<i64: 1, 128>}, {pipeline_mode = #tpu.pipeline_mode<synchronous>, transform_indices = @transform_7, window_bounds = array<i64: 128, 128>}, {pipeline_mode = #tpu.pipeline_mode<synchronous>, transform_indices = @transform_8, window_bounds = array<i64: 1, 128>}, {pipeline_mode = #tpu.pipeline_mode<synchronous>, transform_indices = @transform_9, window_bounds = array<i64: 128, 128>}, {pipeline_mode = #tpu.pipeline_mode<synchronous>, transform_indices = @transform_10, window_bounds = array<i64: 1, 128>}, {transform_indices = @transform_11, window_bounds = array<i64: 8, 128>}]} {
    %c0 = arith.constant 0 : index
    %c0_0 = arith.constant 0 : index
    %0 = vector.load %arg1[%c0, %c0_0] : memref<8x32xf32, #tpu.memory_space<vmem>>, vector<8x32xf32>
    %1 = arith.truncf %0 : vector<8x32xf32> to vector<8x32xbf16>
    %c0_1 = arith.constant 0 : index
    %c0_2 = arith.constant 0 : index
    %2 = vector.load %arg2[%c0_1, %c0_2] : memref<32x512xbf16, #tpu.memory_space<vmem>>, vector<32x512xbf16>
    %cst = arith.constant dense<0.000000e+00> : vector<8x512xf32>
    %3 = tpu.matmul %1, %2, %cst {dimension_numbers = #tpu.dot_dimension_numbers<[1], [0], [0], [1], [0, 0, 1, 1], [], []>} : vector<8x32xbf16>, vector<32x512xbf16>, vector<8x512xf32> -> vector<8x512xf32>
    %c0_3 = arith.constant 0 : index
    %c0_4 = arith.constant 0 : index
    %4 = vector.load %arg3[%c0_3, %c0_4] : memref<1x512xf32, #tpu.memory_space<vmem>>, vector<1x512xf32>
    %5 = vector.broadcast %4 : vector<1x512xf32> to vector<8x512xf32>
    %6 = arith.addf %3, %5 : vector<8x512xf32>
    %cst_5 = arith.constant 0.000000e+00 : f32
    %7 = vector.broadcast %cst_5 : f32 to vector<8x512xf32>
    %8 = arith.maximumf %6, %7 : vector<8x512xf32>
    %9 = arith.truncf %8 : vector<8x512xf32> to vector<8x512xbf16>
    %c0_6 = arith.constant 0 : index
    %c0_7 = arith.constant 0 : index
    %10 = vector.load %arg4[%c0_6, %c0_7] : memref<512x256xbf16, #tpu.memory_space<vmem>>, vector<512x256xbf16>
    %cst_8 = arith.constant dense<0.000000e+00> : vector<8x256xf32>
    %11 = tpu.matmul %9, %10, %cst_8 {dimension_numbers = #tpu.dot_dimension_numbers<[1], [0], [0], [1], [0, 0, 1, 1], [], []>} : vector<8x512xbf16>, vector<512x256xbf16>, vector<8x256xf32> -> vector<8x256xf32>
    %c0_9 = arith.constant 0 : index
    %c0_10 = arith.constant 0 : index
    %12 = vector.load %arg5[%c0_9, %c0_10] : memref<1x256xf32, #tpu.memory_space<vmem>>, vector<1x256xf32>
    %13 = vector.broadcast %12 : vector<1x256xf32> to vector<8x256xf32>
    %14 = arith.addf %11, %13 : vector<8x256xf32>
    %cst_11 = arith.constant 0.000000e+00 : f32
    %15 = vector.broadcast %cst_11 : f32 to vector<8x256xf32>
    %16 = arith.maximumf %14, %15 : vector<8x256xf32>
    %17 = arith.truncf %16 : vector<8x256xf32> to vector<8x256xbf16>
    %c0_12 = arith.constant 0 : index
    %c0_13 = arith.constant 0 : index
    %18 = vector.load %arg6[%c0_12, %c0_13] : memref<256x128xbf16, #tpu.memory_space<vmem>>, vector<256x128xbf16>
    %cst_14 = arith.constant dense<0.000000e+00> : vector<8x128xf32>
    %19 = tpu.matmul %17, %18, %cst_14 {dimension_numbers = #tpu.dot_dimension_numbers<[1], [0], [0], [1], [0, 0, 1, 1], [], []>} : vector<8x256xbf16>, vector<256x128xbf16>, vector<8x128xf32> -> vector<8x128xf32>
    %c0_15 = arith.constant 0 : index
    %c0_16 = arith.constant 0 : index
    %20 = vector.load %arg7[%c0_15, %c0_16] : memref<1x128xf32, #tpu.memory_space<vmem>>, vector<1x128xf32>
    %21 = vector.broadcast %20 : vector<1x128xf32> to vector<8x128xf32>
    %22 = arith.addf %19, %21 : vector<8x128xf32>
    %cst_17 = arith.constant 0.000000e+00 : f32
    %23 = vector.broadcast %cst_17 : f32 to vector<8x128xf32>
    %24 = arith.maximumf %22, %23 : vector<8x128xf32>
    %25 = arith.truncf %24 : vector<8x128xf32> to vector<8x128xbf16>
    %c0_18 = arith.constant 0 : index
    %c0_19 = arith.constant 0 : index
    %26 = vector.load %arg8[%c0_18, %c0_19] : memref<128x128xbf16, #tpu.memory_space<vmem>>, vector<128x128xbf16>
    %cst_20 = arith.constant dense<0.000000e+00> : vector<8x128xf32>
    %27 = tpu.matmul %25, %26, %cst_20 {dimension_numbers = #tpu.dot_dimension_numbers<[1], [0], [0], [1], [0, 0, 1, 1], [], []>} : vector<8x128xbf16>, vector<128x128xbf16>, vector<8x128xf32> -> vector<8x128xf32>
    %c0_21 = arith.constant 0 : index
    %c0_22 = arith.constant 0 : index
    %28 = vector.load %arg9[%c0_21, %c0_22] : memref<1x128xf32, #tpu.memory_space<vmem>>, vector<1x128xf32>
    %29 = vector.broadcast %28 : vector<1x128xf32> to vector<8x128xf32>
    %30 = arith.addf %27, %29 : vector<8x128xf32>
    %cst_23 = arith.constant 0.000000e+00 : f32
    %31 = vector.broadcast %cst_23 : f32 to vector<8x128xf32>
    %32 = arith.maximumf %30, %31 : vector<8x128xf32>
    %33 = arith.truncf %32 : vector<8x128xf32> to vector<8x128xbf16>
    %c0_24 = arith.constant 0 : index
    %c0_25 = arith.constant 0 : index
    %34 = vector.load %arg10[%c0_24, %c0_25] : memref<128x128xbf16, #tpu.memory_space<vmem>>, vector<128x128xbf16>
    %cst_26 = arith.constant dense<0.000000e+00> : vector<8x128xf32>
    %35 = tpu.matmul %33, %34, %cst_26 {dimension_numbers = #tpu.dot_dimension_numbers<[1], [0], [0], [1], [0, 0, 1, 1], [], []>} : vector<8x128xbf16>, vector<128x128xbf16>, vector<8x128xf32> -> vector<8x128xf32>
    %c0_27 = arith.constant 0 : index
    %c0_28 = arith.constant 0 : index
    %36 = vector.load %arg11[%c0_27, %c0_28] : memref<1x128xf32, #tpu.memory_space<vmem>>, vector<1x128xf32>
    %37 = vector.broadcast %36 : vector<1x128xf32> to vector<8x128xf32>
    %38 = arith.addf %35, %37 : vector<8x128xf32>
    %c0_29 = arith.constant 0 : index
    %c0_30 = arith.constant 0 : index
    %39 = vector.load %arg12[%c0_29, %c0_30] : memref<8x128xf32, #tpu.memory_space<vmem>>, vector<8x128xf32>
    tpu.vector_store %arg12[%c0_29, %c0_30], %38 {strides = array<i32>} : memref<8x128xf32, #tpu.memory_space<vmem>>, vector<8x128xf32>,
    return
  }
  func.func @transform_0(%arg0: i32) -> (i32, i32) {
    %c0_i32 = arith.constant 0 : i32
    %c0_i32_0 = arith.constant 0 : i32
    return %arg0, %c0_i32 : i32, i32
  }
  func.func @transform_1(%arg0: i32) -> (i32, i32) {
    %c0_i32 = arith.constant 0 : i32
    %c0_i32_0 = arith.constant 0 : i32
    %c0_i32_1 = arith.constant 0 : i32
    return %c0_i32, %c0_i32_0 : i32, i32
  }
  func.func @transform_2(%arg0: i32) -> (i32, i32) {
    %c0_i32 = arith.constant 0 : i32
    %c0_i32_0 = arith.constant 0 : i32
    %c0_i32_1 = arith.constant 0 : i32
    return %c0_i32, %c0_i32_0 : i32, i32
  }
  func.func @transform_3(%arg0: i32) -> (i32, i32) {
    %c0_i32 = arith.constant 0 : i32
    %c0_i32_0 = arith.constant 0 : i32
    %c0_i32_1 = arith.constant 0 : i32
    return %c0_i32, %c0_i32_0 : i32, i32
  }
  func.func @transform_4(%arg0: i32) -> (i32, i32) {
    %c0_i32 = arith.constant 0 : i32
    %c0_i32_0 = arith.constant 0 : i32
    %c0_i32_1 = arith.constant 0 : i32
    return %c0_i32, %c0_i32_0 : i32, i32
  }
  func.func @transform_5(%arg0: i32) -> (i32, i32) {
    %c0_i32 = arith.constant 0 : i32
    %c0_i32_0 = arith.constant 0 : i32
    %c0_i32_1 = arith.constant 0 : i32
    return %c0_i32, %c0_i32_0 : i32, i32
  }
  func.func @transform_6(%arg0: i32) -> (i32, i32) {
    %c0_i32 = arith.constant 0 : i32
    %c0_i32_0 = arith.constant 0 : i32
    %c0_i32_1 = arith.constant 0 : i32
    return %c0_i32, %c0_i32_0 : i32, i32
  }
  func.func @transform_7(%arg0: i32) -> (i32, i32) {
    %c0_i32 = arith.constant 0 : i32
    %c0_i32_0 = arith.constant 0 : i32
    %c0_i32_1 = arith.constant 0 : i32
    return %c0_i32, %c0_i32_0 : i32, i32
  }
  func.func @transform_8(%arg0: i32) -> (i32, i32) {
    %c0_i32 = arith.constant 0 : i32
    %c0_i32_0 = arith.constant 0 : i32
    %c0_i32_1 = arith.constant 0 : i32
    return %c0_i32, %c0_i32_0 : i32, i32
  }
  func.func @transform_9(%arg0: i32) -> (i32, i32) {
    %c0_i32 = arith.constant 0 : i32
    %c0_i32_0 = arith.constant 0 : i32
    %c0_i32_1 = arith.constant 0 : i32
    return %c0_i32, %c0_i32_0 : i32, i32
  }
  func.func @transform_10(%arg0: i32) -> (i32, i32) {
    %c0_i32 = arith.constant 0 : i32
    %c0_i32_0 = arith.constant 0 : i32
    %c0_i32_1 = arith.constant 0 : i32
    return %c0_i32, %c0_i32_0 : i32, i32
  }
  func.func @transform_11(%arg0: i32) -> (i32, i32) {
    %c0_i32 = arith.constant 0 : i32
    %c0_i32_0 = arith.constant 0 : i32
    return %arg0, %c0_i32 : i32, i32
  }
}

</mosaic_0001>

<bundles_post_ra>
// kernel: tpu_custom_call.1
= control target key start
LH: loop header
LB: loop body
LE: loop exit
PB: predicated region body
PF: predicated region fallthrough
CT: control target
= control target key end

     0   :  { %s2765_s0 = inlined_call_operand.hbm [shape: f32[16,32], index: 0, kind: input, shape index: {}]   ;;  %s2766_s1 = inlined_call_operand.hbm [shape: bf16[32,512], index: 1, kind: input, shape index: {}]   ;;  %s2767_s2 = inlined_call_operand.hbm [shape: f32[1,512], index: 2, kind: input, shape index: {}]   ;;  %s2768_s3 = inlined_call_operand.hbm [shape: bf16[512,256], index: 3, kind: input, shape index: {}]   ;;  %s2769_s4 = inlined_call_operand.vmem [shape: f32[1,256], index: 4, kind: input, shape index: {}]   ;;  %s2770_s5 = inlined_call_operand.hbm [shape: bf16[256,128], index: 5, kind: input, shape index: {}]   ;;  %s2771_s6 = inlined_call_operand.vmem [shape: f32[1,128], index: 6, kind: input, shape index: {}]   ;;  %s2772_s7 = inlined_call_operand.hbm [shape: bf16[128,128], index: 7, kind: input, shape index: {}]   ;;  %s2773_s8 = inlined_call_operand.vmem [shape: f32[1,128], index: 8, kind: input, shape index: {}]   ;;  %s2774_s9 = inlined_call_operand.hbm [shape: bf16[128,128], index: 9, kind: input, shape index: {}]   ;;  %s2775_s10 = inlined_call_operand.vmem [shape: f32[1,128], index: 10, kind: input, shape index: {}]   ;;  %s2776_s11 = inlined_call_operand.hbm [shape: f32[16,128], index: 11, kind: output, shape index: {}]  }
   0x1   :  { %2781 = sst [smem:[#allocation20_spill]] %s2766_s1 }
   0x2   :  { %2782 = sst [smem:[#allocation21_spill]] %s2767_s2 }
   0x3   :  { %2783 = sst [smem:[#allocation22_spill]] %s2768_s3 }
   0x4   :  { %2784 = sst [smem:[#allocation23_spill]] %s2770_s5 }
   0x5   :  { %2785 = sst [smem:[#allocation24_spill]] %s2772_s7 }
   0x6   :  { %2786 = sst [smem:[#allocation25_spill]] %s2774_s9 }
   0x7   :  { %16 = vsyncpa [#allocation3], 0 }
   0x8   :  { %18 = vsyncpa [#allocation3 + $0x1], 0 }
   0x9   :  { %19 = vsyncpa [#allocation6], 0 }
   0xa   :  { %20 = vsyncpa [#allocation9], 0 }
   0xb   :  { %21 = vsyncpa [#allocation12], 0 }
   0xc   :  { %22 = vsyncpa [#allocation4], 0 }
   0xd   :  { %24 = vsyncpa [#allocation4 + $0x1], 0  ;;  %s2487_s17 = smov 0   ;;  %s2489_s18 = smov 0  }
   0xe   :  { %s2491_s19 = smov 0   ;;  %s2493_s20 = smov 0  }
   0xf LB: > { %s2410_s21 = smov [#allocation5]   ;;  %s2508_s23 = sadd.s32 4294967295, %s2408_s20   ;;  %s2408_s20 = sphi %s2493_s20, %s2816_s20   ;;  %s2404_s19 = sphi %s2491_s19, %s2815_s19   ;;  %s2400_s18 = sphi %s2489_s18, %s2814_s18   ;;  %s2396_s17 = sphi %s2487_s17, %s2813_s17  }
  0x10   : > { %s309_s22 = sshll.u32 %s2410_s21, 4  ;;  %p1680_p0 = scmp.ge.s32.totalorder %s2408_s20, 1  ;;  %s310_s22 = int_to_ptr.vmem [resolvable:$true] %s309_s22 }
  0x11   : > { %p2777_p1 = scmp.eq.s32.totalorder %s2508_s23, 0  ;;  %p297_p2 = scmp.lt.s32.totalorder %s2408_s20, 3 }
  0x12   : > { %s2411_s25 = smov [#allocation8]   ;;  %s2159_s29 = scalar_lea.vmem %s310_s22, 1024 }
  0x13   : > { %p2513_p3 = pnand %p1680_p0, %p297_p2  ;;  %s333_s26 = sshll.u32 %s2411_s25, 4  ;;  %s334_s26 = int_to_ptr.vmem [resolvable:$true] %s333_s26 }
  0x14   : > { %p2160_p8 = scmp.ne.s32.totalorder %s310_s22, %s2159_s29  ;;  %p2167_p11 = scmp.lt.s32.totalorder %s310_s22, %s310_s22 }
  0x15   : > { %s2787_s24 = scalar_select %p2513_p3, 1, 0 }
  0x16   : > { %p1920_p5 = pneg %p2513_p3  ;;  %p2168_p12 = scmp.lt.s32.totalorder %s2159_s29, %s2159_s29 }
  0x18   : > { %p2522_p6 = pnand %p1920_p5, %p2777_p1  ;;  %p2169_p13 = por %p2168_p12, %p2167_p11 }
  0x1a   : > { %p2528_p7 = pneg %p2522_p6 }
  0x1c   : > { %p2162_p9 = pnand %p2160_p8, %p2528_p7 }
  0x1e   : > { %p2163_p10 = pneg %p2162_p9 }
  0x20   : > { %p2170_p0 = pnand %p2169_p13, %p2163_p10 }
  0x22   : > { %2173 = shalt.err (!%p2170_p0)
}
  0x23   : > { %s2412_s30 = smov 256   ;;  %s2413_s12 = smov 16  }
  0x24   : > { %s2790_s1 = sld [smem:[#allocation20_spill]]  ;;  %s2185_s15 = scalar_lea.vmem %s334_s26, 8192 }
  0x25   : > { %p2186_p2 = scmp.ne.s32.totalorder %s334_s26, %s2185_s15  ;;  %p2193_p9 = scmp.lt.s32.totalorder %s334_s26, %s334_s26 }
  0x26   : > { %p2194_p4 = scmp.lt.s32.totalorder %s2185_s15, %s2185_s15 }
  0x27   : > { %p2188_p5 = pnand %p2186_p2, %p2528_p7 }
  0x28   : > { %p2195_p1 = por %p2194_p4, %p2193_p9 }
  0x29   : > { %p2189_p8 = pneg %p2188_p5 }
  0x2a   : > { %1923 = dma.hbm_to_vmem [thread:$0]  (!%p2522_p6), %s2790_s1, 1024, %s310_s22, [#allocation6], %s2412_s30, %s2412_s30, %s2413_s12  }
  0x2b   : > { %p2196_p11 = pnand %p2195_p1, %p2189_p8 }
  0x2d   : > { %2199 = shalt.err (!%p2196_p11)
}
  0x2e   : > { %s2414_s16 = smov 128   ;;  %s2415_s21 = smov 8  }
  0x2f   : > { %s2791_s3 = sld [smem:[#allocation22_spill]]  ;;  %s2416_s22 = smov [#allocation11]  }
  0x30   : > { %s365_s30 = sshll.u32 %s2416_s22, 4  ;;  %s2417_s12 = smov [#allocation7]   ;;  %s366_s30 = int_to_ptr.vmem [resolvable:$true] %s365_s30 }
  0x31   : > { %s323_s13 = sshll.u32 %s2417_s12, 4  ;;  %s2211_s14 = scalar_lea.vmem %s366_s30, 1024  ;;  %s324_s13 = int_to_ptr.vmem [resolvable:$true] %s323_s13 }
  0x32   : > { %p2212_p10 = scmp.ne.s32.totalorder %s366_s30, %s2211_s14  ;;  %p2219_p12 = scmp.lt.s32.totalorder %s366_s30, %s366_s30 }
  0x33   : > { %p2220_p13 = scmp.lt.s32.totalorder %s2211_s14, %s2211_s14 }
  0x34   : > { %p2214_p1 = pnand %p2212_p10, %p2528_p7 }
  0x35   : > { %1929 = dma.hbm_to_vmem [thread:$0]  (!%p2522_p6), %s2791_s3, 8192, %s334_s26, [#allocation9], %s2414_s16, %s2414_s16, %s2415_s21  }
  0x36   : > { %p2215_p4 = pneg %p2214_p1  ;;  %p2221_p0 = por %p2220_p13, %p2219_p12 }
  0x38   : > { %p2222_p2 = pnand %p2221_p0, %p2215_p4 }
  0x3a   : > { %2225 = shalt.err (!%p2222_p2)
}
  0x3b   : > { %s2418_s15 = smov 64   ;;  %s2419_s26 = smov 4  }
  0x3c   : > { %s2792_s7 = sld [smem:[#allocation24_spill]]  ;;  %s2237_s25 = scalar_lea.vmem %s324_s13, 64 }
  0x3d   : > { %p2238_p5 = scmp.ne.s32.totalorder %s324_s13, %s2237_s25  ;;  %p2245_p11 = scmp.lt.s32.totalorder %s324_s13, %s324_s13 }
  0x3e   : > { %p2246_p10 = scmp.lt.s32.totalorder %s2237_s25, %s2237_s25 }
  0x3f   : > { %p2240_p8 = pnand %p2238_p5, %p2528_p7 }
  0x40   : > { %p2247_p1 = por %p2246_p10, %p2245_p11 }
  0x41   : > { %p2241_p9 = pneg %p2240_p8 }
  0x42   : > { %1935 = dma.hbm_to_vmem [thread:$0]  (!%p2522_p6), %s2792_s7, 1024, %s366_s30, [#allocation12], %s2418_s15, %s2418_s15, %s2419_s26  }
  0x43   : > { %p2248_p4 = pnand %p2247_p1, %p2241_p9 }
  0x45   : > { %2251 = shalt.err (!%p2248_p4)
}
  0x46   : > { %s2793_s2 = sld [smem:[#allocation21_spill]]  ;;  %s2420_s12 = smov [#allocation10]  }
  0x47   : > { %s349_s14 = sshll.u32 %s2420_s12, 4  ;;  %s2421_s30 = smov [#allocation13]   ;;  %s350_s14 = int_to_ptr.vmem [resolvable:$true] %s349_s14 }
  0x48   : > { %s381_s16 = sshll.u32 %s2421_s30, 4  ;;  %s2263_s21 = scalar_lea.vmem %s350_s14, 2048  ;;  %s382_s16 = int_to_ptr.vmem [resolvable:$true] %s381_s16 }
  0x49   : > { %p2264_p12 = scmp.ne.s32.totalorder %s350_s14, %s2263_s21  ;;  %p2271_p2 = scmp.lt.s32.totalorder %s350_s14, %s350_s14 }
  0x4a   : > { %p2272_p5 = scmp.lt.s32.totalorder %s2263_s21, %s2263_s21 }
  0x4b   : > { %p2266_p13 = pnand %p2264_p12, %p2528_p7 }
  0x4c   : > { %1926 = dma.hbm_to_vmem [thread:$0]  (!%p2522_p6), %s2793_s2, 64, %s324_s13, [#allocation6]  }
  0x4d   : > { %p2267_p0 = pneg %p2266_p13  ;;  %p2273_p8 = por %p2272_p5, %p2271_p2 }
  0x4f   : > { %p2274_p9 = pnand %p2273_p8, %p2267_p0 }
  0x51   : > { %2277 = shalt.err (!%p2274_p9)
}
  0x52   : > { %s2794_s5 = sld [smem:[#allocation23_spill]]  ;;  %s2289_s29 = scalar_lea.vmem %s382_s16, 1024 }
  0x53   : > { %p2290_p11 = scmp.ne.s32.totalorder %s382_s16, %s2289_s29  ;;  %p2297_p4 = scmp.lt.s32.totalorder %s382_s16, %s382_s16 }
  0x54   : > { %p2298_p12 = scmp.lt.s32.totalorder %s2289_s29, %s2289_s29 }
  0x55   : > { %p2292_p10 = pnand %p2290_p11, %p2528_p7 }
  0x56   : > { %p2299_p13 = por %p2298_p12, %p2297_p4 }
  0x57   : > { %p2293_p1 = pneg %p2292_p10 }
  0x58   : > { %1932 = dma.hbm_to_vmem [thread:$0]  (!%p2522_p6), %s2794_s5, 2048, %s350_s14, [#allocation9], %s2418_s15, %s2418_s15, %s2419_s26  }
  0x59   : > { %p2300_p0 = pnand %p2299_p13, %p2293_p1 }
  0x5b   : > { %2303 = shalt.err (!%p2300_p0)
}
  0x5c   : > { %s2795_s9 = sld [smem:[#allocation25_spill]]  ;;  %s1679_s27 = sadd.s32 4294967294, %s2408_s20  }
  0x5d   : > { %s2585_s28 = sadd.s32 1, %s2408_s20   ;;  %s37_s30 = sadd.s32 1, %s2404_s19 }
  0x5e   : > { %s34_s14 = ssub.s32 %s2408_s20, %s2585_s28  ;;  %p44_p2 = scmp.ne.s32.totalorder %s2404_s19, %s2400_s18 }
  0x5f   : > { %p35_p7 = scmp.eq.s32.totalorder %s34_s14, 0  ;;  %p45_p5 = scmp.eq.s32.totalorder %s2408_s20, 0 }
  0x60   : > { %p50_p8 = scmp.ne.s32.totalorder %s2400_s18, %s2396_s17  ;;  %p2797_p11 = scmp.eq.s32.totalorder %s2508_s23, 0 }
  0x61   : > { %s2596_s21 = scalar_select %p35_p7, %s2404_s19, %s37_s30  }
  0x62   : > { %1938 = dma.hbm_to_vmem [thread:$0]  (!%p2522_p6), %s2795_s9, 1024, %s382_s16, [#allocation12], %s2418_s15, %s2418_s15, %s2419_s26  }
  0x63   : > { %p2598_p9 = por %p45_p5, %p44_p2  ;;  %p2604_p6 = por %p2797_p11, %p50_p8 }
  0x64   : > { %p284_p10 = scmp.eq.s32.totalorder %s2508_s23, 1  ;;  %p290_p1 = scmp.eq.s32.totalorder %s1679_s27, 1 }
  0x65   : > { %s2798_s15 = scalar_select %p2604_p6, 1, 0 }
  0x66   : > { %p1953_p4 = scmp.lt.s32.totalorder %s2408_s20, 2  ;;  %s398_s26 = sand.u32 1, %s2404_s19  }
  0x67   : > { %p2611_p12 = por %p284_p10, %p44_p2  ;;  %p2615_p13 = por %p290_p1, %p50_p8 }
  0x68   : > { %s1688_s29 = sshll.u32 %s398_s26, 3  ;;  %s1689_s22 = sshll.u32 %s2408_s20, 7 }
  0x69   : > { %s2799_s16 = scalar_select %p2611_p12, 1, 0 }
  0x6a   : > { %s2800_s25 = scalar_select %p2615_p13, 1, 0 }
  0x6b   : > { %s2623_s30 = scalar_lea.hbm %s2765_s0, %s1689_s22  ;;  %s402_s27 = scalar_lea.vmem [#allocation2], %s1688_s29 }
  0x6c   : > { %s409_s1 = sshll.u32 %s402_s27, 4  ;;  %p2627_p0 = pnand %p1953_p4, %p2598_p9  ;;  %s410_s1 = int_to_ptr.vmem [resolvable:$true] %s409_s1 }
  0x6d   : > { %s399_s3 = scalar_lea.sflag [#allocation3], %s398_s26  ;;  %s2304_s5 = scalar_lea.hbm %s2623_s30, 128 }
  0x6e   : > { %p2305_p7 = scmp.ne.s32.totalorder %s2623_s30, %s2304_s5  ;;  %p2306_p2 = pneg %p2627_p0 }
  0x6f   : > { %s2309_s14 = scalar_lea.hbm %s2765_s0, 256  ;;  %p2310_p11 = scmp.lt.s32.totalorder %s2623_s30, %s2765_s0 }
  0x70   : > { %p2307_p5 = pnand %p2306_p2, %p2305_p7  ;;  %p2311_p9 = scmp.lt.s32.totalorder %s2309_s14, %s2304_s5 }
  0x72   : > { %p2308_p8 = pneg %p2307_p5  ;;  %p2312_p10 = por %p2311_p9, %p2310_p11 }
  0x74   : > { %p2313_p1 = pnand %p2312_p10, %p2308_p8 }
  0x76   : > { %2316 = shalt.err (!%p2313_p1)
}
  0x77   : > { %s2317_s13 = scalar_lea.vmem %s410_s1, 128  ;;  %s2422_s26 = smov [#allocation2]  }
  0x78   : > { %p2318_p4 = scmp.ne.s32.totalorder %s410_s1, %s2317_s13  ;;  %s2322_s7 = sshll.u32 %s2422_s26, 4  ;;  %s2323_s7 = int_to_ptr.vmem [resolvable:$false] %s2322_s7 }
  0x79   : > { %s2324_s9 = scalar_lea.vmem %s2323_s7, 256  ;;  %p2325_p7 = scmp.lt.s32.totalorder %s410_s1, %s2323_s7 }
  0x7a   : > { %p2320_p13 = pnand %p2318_p4, %p2306_p2  ;;  %p2326_p5 = scmp.lt.s32.totalorder %s2324_s9, %s2317_s13 }
  0x7c   : > { %p2321_p12 = pneg %p2320_p13  ;;  %p2327_p6 = por %p2326_p5, %p2325_p7 }
  0x7e   : > { %p2328_p3 = pnand %p2327_p6, %p2321_p12 }
  0x80   : > { %2331 = shalt.err (!%p2328_p3)
}
  0x81   : > { %1942 = dma.hbm_to_vmem [thread:$0]  (!%p2627_p0), %s2623_s30, 128, %s410_s1, %s399_s3  }
  0x82   : > { %p2802_p8 = scmp.ne.s32.totalorder %s2787_s24, 0 }
  0x83   : > { %s2648_s5 = sand.u32 (!%p2802_p8), 1, %s2400_s18   ;;  %p2803_p6 = scmp.ne.s32.totalorder (!%p2802_p8), %s2798_s15, 0 }
  0x84   : > { %418 = sbr.rel (%p2802_p8) target bundleno = 1180 (0x49c), region = 64  ;;  %s1691_s22 = sshll.u32 (!%p2802_p8), %s2648_s5, 3 }
  0x85   : > { %s421_s7 = scalar_lea.sflag (!%p2802_p8), [#allocation3], %s2648_s5  ;;  %s424_s9 = scalar_lea.vmem (!%p2802_p8), [#allocation2], %s1691_s22 }
  0x89   : > { %2375 = dma.done.wait (%p2803_p6), %s421_s7, 128  }
  0x8a   : > { %2377 = vsyncadd (%p2803_p6), %s421_s7, 4294967168  ;;  %p2804_p3 = scmp.eq.s32.totalorder %s2508_s23, 0 }
  0x8c   : > { %2379 = dma.done.wait (%p2804_p3), [#allocation6], 1088   ;;  %p2805_p12 = pmov %p2804_p3 }
  0x8d   : > { %p2806_p13 = pmov %p2804_p3 }
  0x8e   : > { %2381 = vsyncadd (%p2805_p12), [#allocation6], 4294966208 }
  0x8f   : > { %2383 = dma.done.wait (%p2806_p13), [#allocation9], 10240   ;;  %p2807_p0 = pmov %p2804_p3 }
  0x91   : > { %2385 = vsyncadd (%p2807_p0), [#allocation9], 4294957056  ;;  %p2808_p2 = pmov %p2807_p0 }
  0x92   : > { %p2809_p11 = pmov %p2807_p0 }
  0x93   : > { %2387 = dma.done.wait (%p2808_p2), [#allocation12], 2048  }
  0x94   : > { %2389 = vsyncadd (%p2809_p11), [#allocation12], 4294965248  ;;  %v2423_v0 = vmov 0   ;;  %v2008_v1 = vld [vmem:[#allocation5 + $0x24] ss:$16 sps:$4 sm:$0xff]   ;;  %vm560_vm0 = vcmask 261120  }
  0x95   : > { %596 = vmatprep.mubr.bf16.mxu1 %v2423_v0  ;;  %v2010_v2 = vld [vmem:[#allocation5 + $0x20] ss:$16 sps:$4 sm:$0xff]   ;;  %576 = vmatprep.subr.bf16.mxu1 %v2008_v1  ;;  %v2011_v3 = vld [vmem:[#allocation5 + $0x4] ss:$16 sps:$4 sm:$0xff]   ;;  %v2016_v6 = vld [vmem:[#allocation5 + $0x2c] ss:$16 sps:$4 sm:$0xff]  }
  0x96   : > { %v2013_v4 = vld [vmem:[#allocation5] ss:$16 sps:$4 sm:$0xff]   ;;  %577 = vmatpush1.bf16.msra.mxu1 %v2010_v2  ;;  %v2014_v7 = vld [vmem:[#allocation5 + $0x28] ss:$16 sps:$4 sm:$0xff]   ;;  %v2022_v10 = vld [vmem:[#allocation8 + $0x70] ss:$8 sps:$4 sm:$0xff]  }
  0x97   : > { %v488_v5 = vld [vmem:[%s424_s9] sm:$0xff]  ;;  %578 = vmatprep.subr.bf16.mxu1 %v2011_v3  ;;  %v2025_v13 = vld [vmem:[#allocation8 + $0x60] ss:$8 sps:$4 sm:$0xff]   ;;  %vm2425_vm1 = vmmov 0   ;;  %s1809_s29 = sshll.u32 %s2508_s23, 7  ;;  %s486_s27 = scalar_lea.vmem [#allocation14], %s1691_s22 }
  0x98   : > { %v489_v8 = vpack.c.bf16 %v488_v5, %v488_v5  ;;  %v2020_v9 = vld [vmem:[#allocation8 + $0x74] ss:$8 sps:$4 sm:$0xff]   ;;  %v2023_v11 = vld [vmem:[#allocation8 + $0x64] ss:$8 sps:$4 sm:$0xff]   ;;  %v2019_v12 = vld [vmem:[#allocation5 + $0xc] ss:$16 sps:$4 sm:$0xff]   ;;  %s2722_s9 = scalar_lea.hbm %s2776_s11, %s1809_s29 }
  0x99   : > { %1050 = vmatprep.subr.bf16.mxu0 %v2020_v9  ;;  %v2026_v14 = vld [vmem:[#allocation8 + $0x54] ss:$8 sps:$4 sm:$0xff]   ;;  %v2031_v17 = vld [vmem:[#allocation8 + $0x50] ss:$8 sps:$4 sm:$0xff]   ;;  %v2032_v18 = vld [vmem:[#allocation8 + $0x44] ss:$8 sps:$4 sm:$0xff]  }
  0x9a   : > { %579 = vmatpush1.bf16.msra.mxu1 %v2013_v4  ;;  %1051 = vmatpush1.bf16.msra.mxu0 %v2022_v10  ;;  %v2017_v15 = vld [vmem:[#allocation5 + $0x8] ss:$16 sps:$4 sm:$0xff]   ;;  %v2028_v19 = vld [vmem:[#allocation8 + $0x170] ss:$8 sps:$4 sm:$0xff]   ;;  %v2037_v21 = vld [vmem:[#allocation8 + $0x40] ss:$8 sps:$4 sm:$0xff]  }
  0x9b   : > { %617 = vmatprep.subr.bf16.mxu1 %v2016_v6  ;;  %1052 = vmatprep.subr.bf16.mxu0 %v2023_v11  ;;  %v2030_v16 = vld [vmem:[#allocation8 + $0x174] ss:$8 sps:$4 sm:$0xff]   ;;  %v2036_v20 = vld [vmem:[#allocation8 + $0x164] ss:$8 sps:$4 sm:$0xff]   ;;  %v2034_v23 = vld [vmem:[#allocation8 + $0x160] ss:$8 sps:$4 sm:$0xff]  }
  0x9c   : > { %v2038_v22 = vld [vmem:[#allocation8 + $0x34] ss:$8 sps:$4 sm:$0xff]   ;;  %v2043_v25 = vld [vmem:[#allocation8 + $0x30] ss:$8 sps:$4 sm:$0xff]   ;;  %v2044_v26 = vld [vmem:[#allocation8 + $0x24] ss:$8 sps:$4 sm:$0xff]  }
  0x9d   : > { %1707 = vmatmul.mubr.msk.bf16.vlgmr.msra.gmra.mxu1 %vm560_vm0, %v489_v8  ;;  %v2042_v24 = vld [vmem:[#allocation8 + $0x154] ss:$8 sps:$4 sm:$0xff]   ;;  %v2040_v27 = vld [vmem:[#allocation8 + $0x150] ss:$8 sps:$4 sm:$0xff]   ;;  %v2048_v28 = vld [vmem:[#allocation8 + $0x144] ss:$8 sps:$4 sm:$0xff]  }
  0x9e   : > { %618 = vmatpush1.bf16.msra.mxu1 %v2014_v7  ;;  %637 = vmatprep.mubr.bf16.mxu1 %v2423_v0  ;;  %v2049_v29 = vld [vmem:[#allocation8 + $0x20] ss:$8 sps:$4 sm:$0xff]   ;;  %v2050_v30 = vld [vmem:[#allocation8 + $0x14] ss:$8 sps:$4 sm:$0xff]   ;;  %v2055_v33 = vld [vmem:[#allocation8 + $0x10] ss:$8 sps:$4 sm:$0xff]  }
  0x9f   : > { %619 = vmatprep.subr.bf16.mxu1 %v2019_v12  ;;  %1053 = vmatpush1.bf16.msra.mxu0 %v2025_v13  ;;  %v2046_v31 = vld [vmem:[#allocation8 + $0x140] ss:$8 sps:$4 sm:$0xff]   ;;  %v2054_v32 = vld [vmem:[#allocation8 + $0x134] ss:$8 sps:$4 sm:$0xff]   ;;  %v2056_v34 = vld [vmem:[#allocation8 + $0x4] ss:$8 sps:$4 sm:$0xff]   ;;  %v500_v12 = vlaneseq }
  0xa0   : > { %1054 = vmatprep.subr.bf16.mxu0 %v2026_v14  ;;  %v2052_v35 = vld [vmem:[#allocation8 + $0x130] ss:$8 sps:$4 sm:$0xff]   ;;  %v2060_v36 = vld [vmem:[#allocation8 + $0x124] ss:$8 sps:$4 sm:$0xff]   ;;  %v2061_v37 = vld [vmem:[#allocation8] ss:$8 sps:$4 sm:$0xff]  }
  0xa1   : > { %v2062_v38 = vld [vmem:[#allocation8 + $0xf4] ss:$8 sps:$4 sm:$0xff]   ;;  %v2058_v39 = vld [vmem:[#allocation8 + $0x120] ss:$8 sps:$4 sm:$0xff]   ;;  %v2067_v41 = vld [vmem:[#allocation8 + $0xf0] ss:$8 sps:$4 sm:$0xff]  }
  0xa2   : > { %620 = vmatpush1.bf16.msra.mxu1 %v2017_v15  ;;  %v2066_v40 = vld [vmem:[#allocation8 + $0x114] ss:$8 sps:$4 sm:$0xff]   ;;  %v2068_v42 = vld [vmem:[#allocation8 + $0xe4] ss:$8 sps:$4 sm:$0xff]   ;;  %v2064_v43 = vld [vmem:[#allocation8 + $0x110] ss:$8 sps:$4 sm:$0xff]  }
  0xa3   : > { %1091 = vmatprep.subr.bf16.mxu1 %v2030_v16  ;;  %1055 = vmatpush1.bf16.msra.mxu0 %v2031_v17  ;;  %v2072_v44 = vld [vmem:[#allocation8 + $0x104] ss:$8 sps:$4 sm:$0xff]   ;;  %v2073_v45 = vld [vmem:[#allocation8 + $0xe0] ss:$8 sps:$4 sm:$0xff]   ;;  %v2074_v46 = vld [vmem:[#allocation8 + $0xd4] ss:$8 sps:$4 sm:$0xff]  }
  0xa4   : > { %1056 = vmatprep.subr.bf16.mxu0 %v2032_v18  ;;  %v2070_v47 = vld [vmem:[#allocation8 + $0x100] ss:$8 sps:$4 sm:$0xff]   ;;  %v2078_v48 = vld [vmem:[#allocation8 + $0x1f4] ss:$8 sps:$4 sm:$0xff]   ;;  %v2079_v49 = vld [vmem:[#allocation8 + $0xd0] ss:$8 sps:$4 sm:$0xff]  }
  0xa5   : > { %1708 = vmatmul.mubr.msk.bf16.vlgmr.msra.gmra.mxu1 %vm560_vm0, %v489_v8  ;;  %v2080_v50 = vld [vmem:[#allocation8 + $0xc4] ss:$8 sps:$4 sm:$0xff]   ;;  %v2076_v51 = vld [vmem:[#allocation8 + $0x1f0] ss:$8 sps:$4 sm:$0xff]   ;;  %v2085_v53 = vld [vmem:[#allocation8 + $0xc0] ss:$8 sps:$4 sm:$0xff]  }
  0xa6   : > { %1092 = vmatpush1.bf16.msra.mxu1 %v2028_v19  ;;  %v2084_v52 = vld [vmem:[#allocation8 + $0x1e4] ss:$8 sps:$4 sm:$0xff]   ;;  %v2086_v54 = vld [vmem:[#allocation8 + $0xb4] ss:$8 sps:$4 sm:$0xff]   ;;  %v2082_v55 = vld [vmem:[#allocation8 + $0x1e0] ss:$8 sps:$4 sm:$0xff]  }
  0xa7   : > { %1093 = vmatprep.subr.bf16.mxu1 %v2036_v20  ;;  %1057 = vmatpush1.bf16.msra.mxu0 %v2037_v21  ;;  %v2090_v56 = vld [vmem:[#allocation8 + $0x1d4] ss:$8 sps:$4 sm:$0xff]   ;;  %v2091_v57 = vld [vmem:[#allocation8 + $0xb0] ss:$8 sps:$4 sm:$0xff]   ;;  %v2092_v58 = vld [vmem:[#allocation8 + $0xa4] ss:$8 sps:$4 sm:$0xff]  }
  0xa8   : > { %1058 = vmatprep.subr.bf16.mxu0 %v2038_v22  ;;  %v2088_v59 = vld [vmem:[#allocation8 + $0x1d0] ss:$8 sps:$4 sm:$0xff]   ;;  %v2096_v60 = vld [vmem:[#allocation8 + $0x1c4] ss:$8 sps:$4 sm:$0xff]   ;;  %v2097_v61 = vld [vmem:[#allocation8 + $0xa0] ss:$8 sps:$4 sm:$0xff]  }
  0xa9   : > { %v2094_v62 = vld [vmem:[#allocation8 + $0x1c0] ss:$8 sps:$4 sm:$0xff]   ;;  %v2098_v63 = vld [vmem:[#allocation8 + $0x94] ss:$8 sps:$4 sm:$0xff]   ;;  %v2100_v1 = vld [vmem:[#allocation8 + $0x1b0] ss:$8 sps:$4 sm:$0xff]  }
  0xaa   : > { %1094 = vmatpush1.bf16.msra.mxu1 %v2034_v23  ;;  %v2102_v0 = vld [vmem:[#allocation8 + $0x1b4] ss:$8 sps:$4 sm:$0xff]   ;;  %v2103_v2 = vld [vmem:[#allocation8 + $0x90] ss:$8 sps:$4 sm:$0xff]   ;;  %v2104_v3 = vld [vmem:[#allocation8 + $0x84] ss:$8 sps:$4 sm:$0xff]  }
  0xab   : > { %1095 = vmatprep.subr.bf16.mxu1 %v2042_v24  ;;  %1059 = vmatpush1.bf16.msra.mxu0 %v2043_v25  ;;  %v2108_v4 = vld [vmem:[#allocation8 + $0x1a4] ss:$8 sps:$4 sm:$0xff]   ;;  %v2106_v5 = vld [vmem:[#allocation8 + $0x1a0] ss:$8 sps:$4 sm:$0xff]   ;;  %v2112_v7 = vld [vmem:[#allocation8 + $0x194] ss:$8 sps:$4 sm:$0xff]  }
  0xac   : > { %1060 = vmatprep.subr.bf16.mxu0 %v2044_v26  ;;  %v2109_v6 = vld [vmem:[#allocation8 + $0x80] ss:$8 sps:$4 sm:$0xff]   ;;  %v2110_v8 = vld [vmem:[#allocation8 + $0x190] ss:$8 sps:$4 sm:$0xff]   ;;  %v2115_v9 = vld [vmem:[#allocation8 + $0x184] ss:$8 sps:$4 sm:$0xff]  }
  0xad   : > { %v2113_v10 = vld [vmem:[#allocation8 + $0x180] ss:$8 sps:$4 sm:$0xff]   ;;  %v2116_v11 = vld [vmem:[#allocation10 + $0x78] sm:$0xff]   ;;  %v2672_v13 = vshrl.u32 %v500_v12, 7  ;;  %s1552_s13 = sshll.u32 %s486_s27, 4  ;;  %s1539_s1 = scalar_lea.sflag [#allocation4], %s2648_s5  ;;  %s2724_s13 = int_to_ptr.vmem [resolvable:$true] %s1552_s13 }
  0xae   : > { %1096 = vmatpush1.bf16.msra.mxu1 %v2040_v27  ;;  %v498_v15 = vld [vmem:[#allocation7] sm:$0xf]  ;;  %s2332_s23 = scalar_lea.vmem %s2724_s13, 128  ;;  %p2810_p10 = scmp.ne.s32.totalorder %s2799_s16, 0 }
  0xaf   : > { %1097 = vmatprep.subr.bf16.mxu1 %v2048_v28  ;;  %1061 = vmatpush1.bf16.msra.mxu0 %v2049_v29  ;;  %v502_v14 = vsub.s32 0, %v2672_v13  ;;  %v506_v16 = vsub.s32 1, %v2672_v13  ;;  %v510_v21 = vsub.s32 2, %v2672_v13  ;;  %v514_v24 = vsub.s32 3, %v2672_v13  ;;  %v2138_v13 = vld [vmem:[#allocation11 + $0x8] sm:$0xff]   ;;  %p2333_p9 = scmp.ne.s32.totalorder %s2724_s13, %s2332_s23  ;;  %s2426_s22 = smov [#allocation14]  }
  0xb0   : > { %1062 = vmatprep.subr.bf16.mxu0 %v2050_v30  ;;  %s2336_s2 = sshll.u32 %s2426_s22, 4  ;;  %s2337_s2 = int_to_ptr.vmem [resolvable:$false] %s2336_s2 }
  0xb1   : > { %v503_v17 = vrot.slane %v498_v15, %v502_v14  ;;  %v507_v18 = vrot.slane %v498_v15, %v506_v16  ;;  %v511_v27 = vrot.slane %v498_v15, %v510_v21  ;;  %p2334_p1 = pnand %p2333_p9, %p2810_p10  ;;  %s2338_s3 = scalar_lea.vmem %s2337_s2, 256 }
  0xb2   : > { %1098 = vmatpush1.bf16.msra.mxu1 %v2046_v31  ;;  %v515_v31 = vrot.slane %v498_v15, %v514_v24  ;;  %v2142_v24 = vld [vmem:[#allocation13 + $0x28] sm:$0xff]   ;;  %p2339_p7 = scmp.lt.s32.totalorder %s2724_s13, %s2337_s2  ;;  %p2340_p5 = scmp.lt.s32.totalorder %s2338_s3, %s2332_s23 }
  0xb3   : > { %1099 = vmatprep.subr.bf16.mxu1 %v2054_v32  ;;  %1063 = vmatpush1.bf16.msra.mxu0 %v2055_v33  ;;  %v2117_v32 = vld [vmem:[#allocation10 + $0x38] sm:$0xff]   ;;  %p2335_p4 = pneg %p2334_p1 }
  0xb4   : > { %1064 = vmatprep.subr.bf16.mxu0 %v2056_v34  ;;  %p2341_p8 = por %p2340_p5, %p2339_p7 }
  0xb6   : > { %1100 = vmatpush1.bf16.msra.mxu1 %v2052_v35  ;;  %v2118_v35 = vld [vmem:[#allocation10 + $0x70] sm:$0xff]   ;;  %p2342_p6 = pnand %p2341_p8, %p2335_p4 }
  0xb7   : > { %1101 = vmatprep.subr.bf16.mxu1 %v2060_v36  ;;  %1065 = vmatpush1.bf16.msra.mxu0 %v2061_v37 }
  0xb8   : > { %1066 = vmatprep.subr.bf16.mxu0 %v2062_v38 }
  0xba   : > { %1102 = vmatpush1.bf16.msra.mxu1 %v2058_v39  ;;  %v2119_v39 = vld [vmem:[#allocation10 + $0x30] sm:$0xff]  }
  0xbb   : > { %1103 = vmatprep.subr.bf16.mxu1 %v2066_v40  ;;  %1067 = vmatpush2.bf16.msra.mxu0 %v2067_v41 }
  0xbc   : > { %1068 = vmatprep.subr.bf16.mxu0 %v2068_v42  ;;  %v2120_v42 = vld [vmem:[#allocation10 + $0x68] sm:$0xff]  }
  0xbe   : > { %1104 = vmatpush1.bf16.msra.mxu1 %v2064_v43 }
  0xbf   : > { %1105 = vmatprep.subr.bf16.mxu1 %v2072_v44  ;;  %1069 = vmatpush2.bf16.msra.mxu0 %v2073_v45 }
  0xc0   : > { %1070 = vmatprep.subr.bf16.mxu0 %v2074_v46  ;;  %v2121_v46 = vld [vmem:[#allocation10 + $0x28] sm:$0xff]  }
  0xc2   : > { %1106 = vmatpush1.bf16.msra.mxu1 %v2070_v47 }
  0xc3   : > { %1107 = vmatprep.subr.bf16.mxu1 %v2078_v48  ;;  %1071 = vmatpush2.bf16.msra.mxu0 %v2079_v49  ;;  %v2122_v48 = vld [vmem:[#allocation10 + $0x60] sm:$0xff]  }
  0xc4   : > { %1072 = vmatprep.subr.bf16.mxu0 %v2080_v50  ;;  %v2123_v49 = vld [vmem:[#allocation10 + $0x20] sm:$0xff]   ;;  %v2124_v50 = vld [vmem:[#allocation10 + $0x58] sm:$0xff]  }
  0xc6   : > { %1108 = vmatpush2.bf16.msra.mxu1 %v2076_v51  ;;  %v2125_v51 = vld [vmem:[#allocation10 + $0x18] sm:$0xff]  }
  0xc7   : > { %1109 = vmatprep.subr.bf16.mxu1 %v2084_v52  ;;  %1073 = vmatpush2.bf16.msra.mxu0 %v2085_v53  ;;  %v2126_v52 = vld [vmem:[#allocation10 + $0x50] sm:$0xff]  }
  0xc8   : > { %1074 = vmatprep.subr.bf16.mxu0 %v2086_v54  ;;  %v2127_v53 = vld [vmem:[#allocation10 + $0x10] sm:$0xff]   ;;  %v2128_v54 = vld [vmem:[#allocation10 + $0x48] sm:$0xff]  }
  0xca   : > { %1110 = vmatpush2.bf16.msra.mxu1 %v2082_v55  ;;  %v2129_v55 = vld [vmem:[#allocation10 + $0x8] sm:$0xff]  }
  0xcb   : > { %1111 = vmatprep.subr.bf16.mxu1 %v2090_v56  ;;  %1075 = vmatpush2.bf16.msra.mxu0 %v2091_v57  ;;  %v2130_v56 = vld [vmem:[#allocation10 + $0x40] sm:$0xff]  }
  0xcc   : > { %1076 = vmatprep.subr.bf16.mxu0 %v2092_v58  ;;  %v2131_v57 = vld [vmem:[#allocation10] sm:$0xff]   ;;  %v2132_v58 = vld [vmem:[#allocation11 + $0x38] sm:$0xff]  }
  0xce   : > { %1112 = vmatpush2.bf16.msra.mxu1 %v2088_v59  ;;  %v2424_v59 = vmov 0.0  }
  0xcf   : > { %1113 = vmatprep.subr.bf16.mxu1 %v2096_v60  ;;  %1077 = vmatpush2.bf16.msra.mxu0 %v2097_v61  ;;  %v2133_v60 = vld [vmem:[#allocation11 + $0x30] sm:$0xff]   ;;  %v2134_v61 = vld [vmem:[#allocation11 + $0x28] sm:$0xff]  }
  0xd0   : > { %1078 = vmatprep.subr.bf16.mxu0 %v2098_v63  ;;  %v2136_v63 = vld [vmem:[#allocation11 + $0x18] sm:$0xff]  }
  0xd2   : > { %1114 = vmatpush2.bf16.msra.mxu1 %v2094_v62  ;;  %v2135_v62 = vld [vmem:[#allocation11 + $0x20] sm:$0xff]  }
  0xd3   : > { %1115 = vmatprep.subr.bf16.mxu1 %v2102_v0  ;;  %1079 = vmatpush2.bf16.msra.mxu0 %v2103_v2  ;;  %v718_v0 = vld [vmem:[%s2769_s4] sm:$0x3] }
  0xd4   : > { %1080 = vmatprep.subr.bf16.mxu0 %v2104_v3  ;;  %v723_v3 = vrot.slane %v718_v0, %v502_v14  ;;  %v2137_v14 = vld [vmem:[#allocation11 + $0x10] sm:$0xff]  }
  0xd6   : > { %1116 = vmatpush2.bf16.msra.mxu1 %v2100_v1 }
  0xd7   : > { %1117 = vmatprep.subr.bf16.mxu1 %v2108_v4  ;;  %1081 = vmatpush2.bf16.msra.mxu0 %v2109_v6 }
  0xd8   : > { %1812 = vmatprep.subr.bf16.mxu0 %v2116_v11 }
  0xda   : > { %1118 = vmatpush2.bf16.msra.mxu1 %v2106_v5  ;;  %v727_v5 = vrot.slane %v718_v0, %v506_v16  ;;  %v2139_v16 = vld [vmem:[#allocation11] sm:$0xff]  }
  0xdb   : > { %1119 = vmatprep.subr.bf16.mxu1 %v2112_v7 }
  0xde   : > { %1120 = vmatpush2.bf16.msra.mxu1 %v2110_v8 }
  0xdf   : > { %1121 = vmatprep.subr.bf16.mxu1 %v2115_v9 }
  0xe2   : > { %1122 = vmatpush2.bf16.msra.mxu1 %v2113_v10 }
  0xe3   : > { %1852 = vmatprep.subr.bf16.mxu1 %v2424_v59 }
 0x15d   : > { %v598_v19 = vpop.f32.mrf.mxu1 }
 0x15e   : > { %v599_v20 = vadd.f32 %v598_v19, %v503_v17 }
 0x15f   : > { %v600_v22 = vpop.f32.mrf.mxu1 }
 0x160   : > { %v601_v23 = vadd.f32 %v600_v22, %v507_v18  ;;  %v646_v25 = vmax.f32 %v599_v20, 0.0  ;;  %v2140_v22 = vld [vmem:[#allocation13 + $0x38] sm:$0xff]  }
 0x161   : > { %v602_v26 = vpop.f32.mrf.mxu1 }
 0x162   : > { %v647_v28 = vmax.f32 %v601_v23, 0.0  ;;  %v650_v33 = vpack.c.bf16 %v646_v25, %v646_v25  ;;  %v2141_v23 = vld [vmem:[#allocation13 + $0x30] sm:$0xff]   ;;  %v2143_v25 = vld [vmem:[#allocation13 + $0x20] sm:$0xff]   ;;  %v2144_v26 = vld [vmem:[#allocation13 + $0x18] sm:$0xff]  }
 0x163   : > { %v603_v29 = vpop.f32.mrf.mxu1 }
 0x164   : > { %v651_v30 = vpack.c.bf16 %v647_v28, %v647_v28  ;;  %v1773_v29 = vld [vmem:[%s2771_s6] ss:$0 sm:$0xff] }
 0x165   : > { %v639_v34 = vpop.f32.mrf.mxu1 }
 0x166   : > { %v640_v36 = vadd.f32 %v639_v34, %v511_v27  ;;  %1082 = vmatprep.mubr.bf16.mxu0 %v651_v30  ;;  %v2145_v27 = vld [vmem:[#allocation13 + $0x10] sm:$0xff]  }
 0x167   : > { %v641_v37 = vpop.f32.mrf.mxu1  ;;  %1083 = vmatmul.mubr.bf16.vlgmr.msra.gmra.mxu0 %v650_v33 }
 0x168   : > { %v642_v38 = vadd.f32 %v641_v37, %v515_v31  ;;  %1813 = vmatpush3.bf16.msra.mxu0 %v2117_v32  ;;  %v648_v40 = vmax.f32 %v640_v36, 0.0  ;;  %v2146_v37 = vld [vmem:[#allocation13 + $0x8] sm:$0xff]  }
 0x169   : > { %v643_v41 = vpop.f32.mrf.mxu1  ;;  %1814 = vmatprep.subr.bf16.mxu0 %v2118_v35 }
 0x16a   : > { %v649_v43 = vmax.f32 %v642_v38, 0.0  ;;  %v652_v47 = vpack.c.bf16 %v648_v40, %v648_v40  ;;  %v2147_v38 = vld [vmem:[#allocation13] sm:$0xff]  }
 0x16b   : > { %v644_v44 = vpop.f32.mrf.mxu1 }
 0x16c   : > { %v653_v45 = vpack.c.bf16 %v649_v43, %v649_v43  ;;  %1815 = vmatpush3.bf16.msra.mxu0 %v2119_v39  ;;  %v1790_v39 = vld [vmem:[%s2773_s8] ss:$0 sm:$0xff] }
 0x16d   : > { %1816 = vmatprep.subr.bf16.mxu0 %v2120_v42 }
 0x16e   : > { %1123 = vmatprep.mubr.bf16.mxu1 %v653_v45 }
 0x16f   : > { %1124 = vmatmul.mubr.bf16.vlgmr.msra.gmra.mxu1 %v652_v47  ;;  %v1799_v47 = vld [vmem:[%s2775_s10] ss:$0 sm:$0xff] }
 0x170   : > { %1817 = vmatpush3.bf16.msra.mxu0 %v2121_v46  ;;  %1853 = vmatpush3.bf16.msra.mxu1 %v2132_v58 }
 0x171   : > { %1818 = vmatprep.subr.bf16.mxu0 %v2122_v48  ;;  %1854 = vmatprep.subr.bf16.mxu1 %v2424_v59 }
 0x172   : > { %1868 = vmatprep.mubr.msk.bf16.mxu1 %vm2425_vm1, %v2424_v59 }
 0x174   : > { %1819 = vmatpush3.bf16.msra.mxu0 %v2123_v49  ;;  %1855 = vmatpush3.bf16.msra.mxu1 %v2133_v60 }
 0x175   : > { %1820 = vmatprep.subr.bf16.mxu0 %v2124_v50  ;;  %1856 = vmatprep.subr.bf16.mxu1 %v2424_v59 }
 0x178   : > { %1821 = vmatpush3.bf16.msra.mxu0 %v2125_v51  ;;  %1857 = vmatpush3.bf16.msra.mxu1 %v2134_v61 }
 0x179   : > { %1822 = vmatprep.subr.bf16.mxu0 %v2126_v52  ;;  %1858 = vmatprep.subr.bf16.mxu1 %v2424_v59 }
 0x17c   : > { %1823 = vmatpush3.bf16.msra.mxu0 %v2127_v53  ;;  %1859 = vmatpush3.bf16.msra.mxu1 %v2135_v62 }
 0x17d   : > { %1824 = vmatprep.subr.bf16.mxu0 %v2128_v54  ;;  %1860 = vmatprep.subr.bf16.mxu1 %v2424_v59 }
 0x180   : > { %1825 = vmatpush3.bf16.msra.mxu0 %v2129_v55  ;;  %1861 = vmatpush3.bf16.msra.mxu1 %v2136_v63 }
 0x181   : > { %1826 = vmatprep.subr.bf16.mxu0 %v2130_v56  ;;  %1862 = vmatprep.subr.bf16.mxu1 %v2424_v59 }
 0x184   : > { %1827 = vmatpush3.bf16.msra.mxu0 %v2131_v57  ;;  %1863 = vmatpush3.bf16.msra.mxu1 %v2137_v14 }
 0x185   : > { %1872 = vmatprep.subr.bf16.mxu0 %v2424_v59  ;;  %1864 = vmatprep.subr.bf16.mxu1 %v2424_v59 }
 0x188   : > { %1865 = vmatpush3.bf16.msra.mxu1 %v2138_v13 }
 0x189   : > { %1866 = vmatprep.subr.bf16.mxu1 %v2424_v59 }
 0x18c   : > { %1867 = vmatpush3.bf16.msra.mxu1 %v2139_v16 }
 0x227   : > { %v1084_v1 = vpop.f32.mrf.mxu0 }
 0x228   : > { %v1085_v7 = vadd.f32 %v1084_v1, %v723_v3 }
 0x229   : > { %v1086_v2 = vpop.f32.mrf.mxu0 }
 0x22a   : > { %v1087_v9 = vadd.f32 %v1086_v2, %v727_v5 }
 0x22b   : > { %v1088_v4 = vpop.f32.mrf.mxu0 }
 0x22d   : > { %v1089_v6 = vpop.f32.mrf.mxu0 }
 0x22f   : > { %v1125_v8 = vpop.f32.mrf.mxu1 }
 0x230   : > { %v1126_v10 = vadd.f32 %v1125_v8, %v1085_v7 }
 0x231   : > { %v1127_v11 = vpop.f32.mrf.mxu1 }
 0x232   : > { %v1128_v12 = vadd.f32 %v1127_v11, %v1087_v9  ;;  %v1132_v15 = vmax.f32 %v1126_v10, 0.0 }
 0x233   : > { %v1129_v17 = vpop.f32.mrf.mxu1 }
 0x234   : > { %v1133_v18 = vmax.f32 %v1128_v12, 0.0  ;;  %v1134_v21 = vpack.c.bf16 %v1132_v15, %v1132_v15 }
 0x235   : > { %v1130_v19 = vpop.f32.mrf.mxu1 }
 0x236   : > { %v1135_v20 = vpack.c.bf16 %v1133_v18, %v1133_v18 }
 0x238   : > { %1303 = vmatprep.mubr.bf16.mxu0 %v1135_v20 }
 0x239   : > { %1304 = vmatmul.mubr.bf16.vlgmr.msra.gmra.mxu0 %v1134_v21 }
 0x23a   : > { %1888 = vmatprep.mubr.msk.bf16.mxu0 %vm2425_vm1, %v2424_v59  ;;  %1873 = vmatpush3.bf16.msra.mxu0 %v2140_v22 }
 0x23b   : > { %1874 = vmatprep.subr.bf16.mxu0 %v2424_v59 }
 0x23e   : > { %1875 = vmatpush3.bf16.msra.mxu0 %v2141_v23 }
 0x23f   : > { %1876 = vmatprep.subr.bf16.mxu0 %v2424_v59 }
 0x242   : > { %1877 = vmatpush3.bf16.msra.mxu0 %v2142_v24 }
 0x243   : > { %1878 = vmatprep.subr.bf16.mxu0 %v2424_v59 }
 0x246   : > { %1879 = vmatpush3.bf16.msra.mxu0 %v2143_v25 }
 0x247   : > { %1880 = vmatprep.subr.bf16.mxu0 %v2424_v59 }
 0x24a   : > { %1881 = vmatpush3.bf16.msra.mxu0 %v2144_v26 }
 0x24b   : > { %1882 = vmatprep.subr.bf16.mxu0 %v2424_v59 }
 0x24e   : > { %1883 = vmatpush3.bf16.msra.mxu0 %v2145_v27 }
 0x24f   : > { %1884 = vmatprep.subr.bf16.mxu0 %v2424_v59 }
 0x252   : > { %1885 = vmatpush3.bf16.msra.mxu0 %v2146_v37 }
 0x253   : > { %1886 = vmatprep.subr.bf16.mxu0 %v2424_v59 }
 0x256   : > { %1887 = vmatpush3.bf16.msra.mxu0 %v2147_v38 }
 0x2f9   : > { %v1828_v28 = vpop.f32.mrf.mxu0 }
 0x2fb   : > { %v1829_v30 = vpop.f32.mrf.mxu0 }
 0x2fc   : > { %v1830_v31 = vadd.f32 %v1829_v30, %v1828_v28 }
 0x2fd   : > { %v1831_v32 = vpop.f32.mrf.mxu0 }
 0x2fe   : > { %v1306_v33 = vadd.f32 %v1830_v31, %v1773_v29 }
 0x2ff   : > { %v1832_v34 = vpop.f32.mrf.mxu0 }
 0x300   : > { %v1311_v35 = vmax.f32 %v1306_v33, 0.0 }
 0x302   : > { %v1312_v36 = vpack.c.bf16 %v1311_v35, %v1311_v35 }
 0x304   : > { %1869 = vmatmul.mubr.bf16.vlgmr.msra.gmra.mxu1 %v1312_v36 }
 0x3c4   : > { %v1418_v40 = vpop.f32.mrf.mxu1 }
 0x3c5   : > { %v1419_v41 = vadd.f32 %v1790_v39, %v1418_v40 }
 0x3c6   : > { %v1870_v42 = vpop.f32.mrf.mxu1 }
 0x3c7   : > { %v1424_v43 = vmax.f32 %v1419_v41, 0.0 }
 0x3c8   : > { %v1421_v44 = vpop.f32.mrf.mxu1 }
 0x3c9   : > { %v1425_v45 = vpack.c.bf16 %v1424_v43, %v1424_v43 }
 0x3ca   : > { %v1871_v46 = vpop.f32.mrf.mxu1 }
 0x3cb   : > { %1889 = vmatmul.mubr.bf16.vlgmr.msra.gmra.mxu0 %v1425_v45 }
 0x48b   : > { %v1531_v48 = vpop.f32.mrf.mxu0 }
 0x48c   : > { %v1532_v49 = vadd.f32 %v1799_v47, %v1531_v48 }
 0x48d   : > { %v1890_v50 = vpop.f32.mrf.mxu0 }
 0x48e   : > { %1537 = vst [vmem:[%s486_s27] sm:$0xff] %v1532_v49 }
 0x48f   : > { %v1534_v51 = vpop.f32.mrf.mxu0 }
 0x490   : > { %2345 = shalt.err (!%p2342_p6)
}
 0x491   : > { %s2346_s24 = scalar_lea.hbm %s2722_s9, 128  ;;  %s2350_s30 = scalar_lea.hbm %s2776_s11, 256 }
 0x492   : > { %p2347_p3 = scmp.ne.s32.totalorder %s2722_s9, %s2346_s24  ;;  %p2351_p0 = scmp.lt.s32.totalorder %s2722_s9, %s2776_s11 }
 0x493   : > { %p2352_p2 = scmp.lt.s32.totalorder %s2350_s30, %s2346_s24 }
 0x494   : > { %p2348_p12 = pnand %p2347_p3, %p2810_p10 }
 0x495   : > { %p2353_p11 = por %p2352_p2, %p2351_p0 }
 0x496   : > { %p2349_p13 = pneg %p2348_p12 }
 0x498   : > { %p2354_p9 = pnand %p2353_p11, %p2349_p13 }
 0x49a   : > { %2357 = shalt.err (!%p2354_p9)
}
 0x49b   : > { %1918 = dma.vmem_to_hbm [thread:$0]  (%p2810_p10), %s2724_s13, 128, %s2722_s9, %s1539_s1   ;;  %v1891_v52 = vpop.f32.mrf.mxu0 }
 0x49c PF: > { %s1564_s29 = sand.u32 1, %s2396_s17   ;;  %p2811_p1 = scmp.ne.s32.totalorder %s2800_s25, 0 }
 0x49d   : > { %p2812_p4 = scmp.ge.s32.totalorder %s2408_s20, 2  ;;  %s1565_s27 = scalar_lea.sflag [#allocation4], %s1564_s29 }
 0x49f   : > { %p1944_p7 = pnand %p2812_p4, %p2811_p1 }
 0x4a1   : > { %p1945_p5 = pneg %p1944_p7 }
 0x4a3   : > { %2391 = dma.done.wait (%p1945_p5), %s1565_s27, 128  }
 0x4a4   : > { %2393 = vsyncadd (%p1945_p5), %s1565_s27, 4294967168  ;;  %p27_p8 = scmp.ge.s32.totalorder %s2585_s28, 4   ;;  %s2813_s17 = smov %s2400_s18 }
 0x4a5   : > { %s2814_s18 = smov %s2404_s19  ;;  %s2815_s19 = smov %s2596_s21 }
 0x4a6   : > { %s2816_s20 = smov %s2585_s28  ;;  %29 = sbr.rel (!%p27_p8) target bundleno = 15 (0xf), region = 133 }
 0x4ab   :  { %1570 = vsyncpa [#allocation3], 1 }
 0x4ac   :  { %1572 = vsyncpa [#allocation3 + $0x1], 1 }
 0x4ad   :  { %1573 = vsyncpa [#allocation6], 1 }
 0x4ae   :  { %1574 = vsyncpa [#allocation9], 1 }
 0x4af   :  { %1575 = vsyncpa [#allocation12], 1 }
 0x4b0   :  { %1576 = vsyncpa [#allocation4], 1 }
 0x4b1   :  { %1578 = vsyncpa [#allocation4 + $0x1], 1 }

</bundles_post_ra>
